<compile_context>
chip_gen: v5e
topology: v5e:2x2
jax: 0.10.0
libtpu: 0.0.40
codegen_flags: <defaults>
</compile_context>

<pallas_src>
import functools

import jax
import jax.numpy as jnp
from jax import lax
from jax.experimental import pallas as pl
from jax.experimental.pallas import tpu as pltpu

_LANE = 128
_POOL_CHUNK = 512  # lanes per f32 accumulation step in the fused squeeze


# ---------------------------------------------------------------------------
# Fused single-pass kernel: one (TN, C, HW) block per grid step.
# ---------------------------------------------------------------------------
def _se_fused_kernel(x_ref, w1t_ref, b1_ref, w2t_ref, b2_ref, o_ref, *, inv_hw):
    tn, c, hw = x_ref.shape

    # Squeeze: chunked f32 accumulation read directly from the input buffer
    # (avoids a full-tile f32 upcast temporary for bf16/int8 inputs).
    acc = jnp.zeros((tn, c), jnp.float32)
    n_full = hw // _POOL_CHUNK
    if n_full > 0:
        def body(i, a):
            off = pl.multiple_of(i * _POOL_CHUNK, _POOL_CHUNK)
            xs = x_ref[:, :, pl.ds(off, _POOL_CHUNK)]
            return a + jnp.sum(xs.astype(jnp.float32), axis=-1)

        acc = lax.fori_loop(0, n_full, body, acc)
    rem = hw - n_full * _POOL_CHUNK
    if rem > 0:
        xs = x_ref[:, :, n_full * _POOL_CHUNK:]
        acc = acc + jnp.sum(xs.astype(jnp.float32), axis=-1)
    s = acc * inv_hw                                               # (TN, C)

    # Excite: two tiny FCs on the MXU, batched over the TN rows of this block.
    h = jnp.dot(s, w1t_ref[...], preferred_element_type=jnp.float32) + b1_ref[...]
    h = jnp.maximum(h, 0.0)                                        # (TN, Cr)
    g = jnp.dot(h, w2t_ref[...], preferred_element_type=jnp.float32) + b2_ref[...]
    g = jax.nn.sigmoid(g)                                          # (TN, C)

    # Scale: lane-splat of the per-(n, c) gate; multiply in the input dtype
    # (no second full-tile f32 upcast, no materialized broadcast).
    o_ref[...] = (x_ref[...] * g.astype(o_ref.dtype)[:, :, None]).astype(o_ref.dtype)


# ---------------------------------------------------------------------------
# Large-activation fallback, pass 1: spatially-tiled pool + excite -> gate.
# ---------------------------------------------------------------------------
def _se_pool_kernel(x_ref, w1t_ref, b1_ref, w2t_ref, b2_ref, gate_ref, acc_ref,
                    *, inv_hw, hw_total, thw, need_mask):
    hw_i = pl.program_id(1)

    @pl.when(hw_i == 0)
    def _():
        acc_ref[...] = jnp.zeros_like(acc_ref)

    xs = x_ref[...].astype(jnp.float32)                            # (1, C, THW)
    if need_mask:
        lane = lax.broadcasted_iota(jnp.int32, xs.shape, 2)
        xs = jnp.where(hw_i * thw + lane < hw_total, xs, 0.0)
    acc_ref[...] += jnp.sum(xs, axis=-1, keepdims=True)            # (1, C, 1)

    @pl.when(hw_i == pl.num_programs(1) - 1)
    def _():
        c = acc_ref.shape[1]
        s = (acc_ref[...] * inv_hw).reshape(1, c)                  # (1, C)
        h = jnp.dot(s, w1t_ref[...], preferred_element_type=jnp.float32) + b1_ref[...]
        h = jnp.maximum(h, 0.0)
        g = jnp.dot(h, w2t_ref[...], preferred_element_type=jnp.float32) + b2_ref[...]
        gate_ref[...] = jax.nn.sigmoid(g)[:, :, None]              # (1, C, 1)


# ---------------------------------------------------------------------------
# Large-activation fallback, pass 2: spatially-tiled channel rescale.
# ---------------------------------------------------------------------------
def _se_scale_kernel(gate_ref, x_ref, o_ref):
    g = gate_ref[...].astype(o_ref.dtype)                          # (1, C, 1)
    o_ref[...] = (x_ref[...] * g).astype(o_ref.dtype)


# ---------------------------------------------------------------------------
# Chip queries / budgeting.
# ---------------------------------------------------------------------------
def _vmem_capacity_bytes():
    try:
        cap = int(pltpu.get_tpu_info().vmem_capacity_bytes)
        if cap > 0:
            return cap
    except Exception:
        pass
    return 64 * 1024 * 1024  # conservative (v7x-sized) fallback


def _is_v7x():
    try:
        return "v7" in jax.devices()[0].device_kind.lower()
    except Exception:
        return False


# ---------------------------------------------------------------------------
# Wrapper.
# ---------------------------------------------------------------------------
def se_forward(x_nchw, w1, b1, w2, b2):
    """x_nchw: (N, C, H, W); w1: (Cr, C); b1: (Cr,); w2: (C, Cr); b2: (C,)."""
    N, C, H, W = x_nchw.shape
    Cr = w1.shape[0]
    HW = H * W
    dtype = x_nchw.dtype
    itemsize = jnp.dtype(dtype).itemsize

    x_flat = x_nchw.reshape(N, C, HW)
    w1t = w1.T                     # (C, Cr)  resident
    w2t = w2.T                     # (Cr, C)  resident
    b1_row = b1.reshape(1, Cr)
    b2_row = b2.reshape(1, C)
    inv_hw = 1.0 / HW

    # Per-chip VMEM budget: ~48 MiB limit / 8 MiB blocks on 64 MiB parts
    # (v7x); ~96 MiB limit / 16 MiB blocks on 128 MiB parts (v5e/v6e).
    vmem_cap = _vmem_capacity_bytes()
    vmem_limit = int(min((vmem_cap * 3) // 4, 112 * 1024 * 1024))
    max_block_bytes = max(vmem_limit // 6, 1 << 20)

    per_elem_bytes = C * HW * itemsize

    if per_elem_bytes <= max_block_bytes:
        # ---- Fused single-pass path ----------------------------------------
        TN = max(1, min(N, max_block_bytes // per_elem_bytes))
        if _is_v7x() and N >= 2:
            # Keep >= 2 (and preferably an even number of) grid steps so the
            # "parallel" batch axis load-balances across v7x's 2 TensorCores.
            # On 1-TC chips (v5e/v6e) we keep the biggest block / fewest steps.
            TN = min(TN, (N + 1) // 2)
            if pl.cdiv(N, TN) % 2 == 1:
                for cand in range(TN, 0, -1):
                    if pl.cdiv(N, cand) % 2 == 0:
                        TN = cand
                        break
        grid = (pl.cdiv(N, TN),)

        kernel = functools.partial(_se_fused_kernel, inv_hw=inv_hw)
        out_flat = pl.pallas_call(
            kernel,
            out_shape=jax.ShapeDtypeStruct((N, C, HW), dtype),
            grid_spec=pltpu.PrefetchScalarGridSpec(
                num_scalar_prefetch=0,
                grid=grid,
                in_specs=[
                    pl.BlockSpec((TN, C, HW), lambda n: (n, 0, 0)),   # x
                    pl.BlockSpec((C, Cr), lambda n: (0, 0)),          # w1.T
                    pl.BlockSpec((1, Cr), lambda n: (0, 0)),          # b1
                    pl.BlockSpec((Cr, C), lambda n: (0, 0)),          # w2.T
                    pl.BlockSpec((1, C), lambda n: (0, 0)),           # b2
                ],
                out_specs=pl.BlockSpec((TN, C, HW), lambda n: (n, 0, 0)),
            ),
            compiler_params=pltpu.CompilerParams(
                dimension_semantics=("parallel",),
                vmem_limit_bytes=vmem_limit,
            ),
        )(x_flat, w1t, b1_row, w2t, b2_row)
        return out_flat.reshape(N, C, H, W)

    # ---- Large-activation fallback: two-pass, spatially tiled --------------
    THW = (max_block_bytes // (C * itemsize)) // _LANE * _LANE
    THW = max(THW, _LANE)
    if THW >= HW:
        THW = HW  # degenerate (huge C): single spatial chunk per element
    hw_steps = pl.cdiv(HW, THW)
    need_mask = (HW % THW) != 0
    grid = (N, hw_steps)

    pool_kernel = functools.partial(
        _se_pool_kernel, inv_hw=inv_hw, hw_total=HW, thw=THW, need_mask=need_mask)
    gate = pl.pallas_call(
        pool_kernel,
        out_shape=jax.ShapeDtypeStruct((N, C, 1), jnp.float32),
        grid_spec=pltpu.PrefetchScalarGridSpec(
            num_scalar_prefetch=0,
            grid=grid,
            in_specs=[
                pl.BlockSpec((1, C, THW), lambda n, h: (n, 0, h)),    # x
                pl.BlockSpec((C, Cr), lambda n, h: (0, 0)),           # w1.T
                pl.BlockSpec((1, Cr), lambda n, h: (0, 0)),           # b1
                pl.BlockSpec((Cr, C), lambda n, h: (0, 0)),           # w2.T
                pl.BlockSpec((1, C), lambda n, h: (0, 0)),            # b2
            ],
            out_specs=pl.BlockSpec((1, C, 1), lambda n, h: (n, 0, 0)),
            scratch_shapes=[pltpu.VMEM((1, C, 1), jnp.float32)],
        ),
        compiler_params=pltpu.CompilerParams(
            dimension_semantics=("parallel", "arbitrary"),
            vmem_limit_bytes=vmem_limit,
        ),
    )(x_flat, w1t, b1_row, w2t, b2_row)

    out_flat = pl.pallas_call(
        _se_scale_kernel,
        out_shape=jax.ShapeDtypeStruct((N, C, HW), dtype),
        grid_spec=pltpu.PrefetchScalarGridSpec(
            num_scalar_prefetch=0,
            grid=grid,
            in_specs=[
                pl.BlockSpec((1, C, 1), lambda n, h: (n, 0, 0)),      # gate
                pl.BlockSpec((1, C, THW), lambda n, h: (n, 0, h)),    # x
            ],
            out_specs=pl.BlockSpec((1, C, THW), lambda n, h: (n, 0, h)),
        ),
        compiler_params=pltpu.CompilerParams(
            dimension_semantics=("parallel", "arbitrary"),
            vmem_limit_bytes=vmem_limit,
        ),
    )(gate, x_flat)
    return out_flat.reshape(N, C, H, W)


def se_reference(x_nchw, w1, b1, w2, b2):
    # Pure-JAX reference for correctness check.
    s = jnp.mean(x_nchw, axis=(2, 3))                          # (N, C)
    h = jax.nn.relu(s @ w1.T + b1)                             # (N, Cr)
    g = jax.nn.sigmoid(h @ w2.T + b2)                          # (N, C)
    return x_nchw * g[:, :, None, None]


if __name__ == "__main__":
    # Small deterministic shapes: batch=2, channels=8, spatial=16x16, reduction=4.
    N, C, H, W = 2, 8, 16, 16
    reduction = 4
    Cr = C // reduction

    key = jax.random.PRNGKey(0)
    kx, k1, kb1, k2, kb2 = jax.random.split(key, 5)

    x = jax.random.normal(kx, (N, C, H, W), dtype=jnp.float32)
    w1 = jax.random.normal(k1, (Cr, C), dtype=jnp.float32) * 0.1   # fc1: C -> Cr
    b1 = jax.random.normal(kb1, (Cr,), dtype=jnp.float32) * 0.1
    w2 = jax.random.normal(k2, (C, Cr), dtype=jnp.float32) * 0.1   # fc2: Cr -> C
    b2 = jax.random.normal(kb2, (C,), dtype=jnp.float32) * 0.1

    out = se_forward(x, w1, b1, w2, b2)
    out = jax.block_until_ready(out)

    ref = se_reference(x, w1, b1, w2, b2)
    assert out.shape == (N, C, H, W)
    assert jnp.allclose(out, ref, atol=1e-5, rtol=1e-5), "mismatch vs reference"

    print("KERNEL_OK")
</pallas_src>

<mosaic_0001>
module attributes {stable_mosaic.version = 11 : i64} {
  func.func @_se_fused_kernel(%arg0: i32, %arg1: memref<2x8x256xf32, #tpu.memory_space<vmem>>, %arg2: memref<8x2xf32, #tpu.memory_space<vmem>>, %arg3: memref<1x2xf32, #tpu.memory_space<vmem>>, %arg4: memref<2x8xf32, #tpu.memory_space<vmem>>, %arg5: memref<1x8xf32, #tpu.memory_space<vmem>>, %arg6: memref<2x8x256xf32, #tpu.memory_space<vmem>>) attributes {dimension_semantics = [#tpu.dimension_semantics<parallel>], iteration_bounds = array<i64: 1>, scalar_prefetch = 0 : i64, scratch_operands = 0 : i64, tpu.core_type = #tpu.core_type<tc>, window_params = [{transform_indices = @transform_0, window_bounds = array<i64: 2, 8, 256>}, {pipeline_mode = #tpu.pipeline_mode<synchronous>, transform_indices = @transform_1, window_bounds = array<i64: 8, 2>}, {pipeline_mode = #tpu.pipeline_mode<synchronous>, transform_indices = @transform_2, window_bounds = array<i64: 1, 2>}, {pipeline_mode = #tpu.pipeline_mode<synchronous>, transform_indices = @transform_3, window_bounds = array<i64: 2, 8>}, {pipeline_mode = #tpu.pipeline_mode<synchronous>, transform_indices = @transform_4, window_bounds = array<i64: 1, 8>}, {transform_indices = @transform_5, window_bounds = array<i64: 2, 8, 256>}]} {
    %cst = arith.constant 0.000000e+00 : f32
    %0 = vector.broadcast %cst : f32 to vector<2x8xf32>
    %c0 = arith.constant 0 : index
    %c0_0 = arith.constant 0 : index
    %c0_1 = arith.constant 0 : index
    %1 = vector.load %arg1[%c0, %c0_0, %c0_1] : memref<2x8x256xf32, #tpu.memory_space<vmem>>, vector<2x8x256xf32>
    %cst_2 = arith.constant dense<0.000000e+00> : vector<2x8xf32>
    %2 = vector.multi_reduction <add>, %1, %cst_2 [2] : vector<2x8x256xf32> to vector<2x8xf32>
    %3 = arith.addf %0, %2 : vector<2x8xf32>
    %cst_3 = arith.constant 3.906250e-03 : f32
    %4 = vector.broadcast %cst_3 : f32 to vector<2x8xf32>
    %5 = arith.mulf %3, %4 : vector<2x8xf32>
    %c0_4 = arith.constant 0 : index
    %c0_5 = arith.constant 0 : index
    %6 = vector.load %arg2[%c0_4, %c0_5] : memref<8x2xf32, #tpu.memory_space<vmem>>, vector<8x2xf32>
    %cst_6 = arith.constant dense<0.000000e+00> : vector<2x2xf32>
    %7 = tpu.matmul %5, %6, %cst_6 {dimension_numbers = #tpu.dot_dimension_numbers<[1], [0], [0], [1], [0, 0, 1, 1], [], []>} : vector<2x8xf32>, vector<8x2xf32>, vector<2x2xf32> -> vector<2x2xf32>
    %c0_7 = arith.constant 0 : index
    %c0_8 = arith.constant 0 : index
    %8 = vector.load %arg3[%c0_7, %c0_8] : memref<1x2xf32, #tpu.memory_space<vmem>>, vector<1x2xf32>
    %9 = vector.broadcast %8 : vector<1x2xf32> to vector<2x2xf32>
    %10 = arith.addf %7, %9 : vector<2x2xf32>
    %cst_9 = arith.constant 0.000000e+00 : f32
    %11 = vector.broadcast %cst_9 : f32 to vector<2x2xf32>
    %12 = arith.maximumf %10, %11 : vector<2x2xf32>
    %c0_10 = arith.constant 0 : index
    %c0_11 = arith.constant 0 : index
    %13 = vector.load %arg4[%c0_10, %c0_11] : memref<2x8xf32, #tpu.memory_space<vmem>>, vector<2x8xf32>
    %cst_12 = arith.constant dense<0.000000e+00> : vector<2x8xf32>
    %14 = tpu.matmul %12, %13, %cst_12 {dimension_numbers = #tpu.dot_dimension_numbers<[1], [0], [0], [1], [0, 0, 1, 1], [], []>} : vector<2x2xf32>, vector<2x8xf32>, vector<2x8xf32> -> vector<2x8xf32>
    %c0_13 = arith.constant 0 : index
    %c0_14 = arith.constant 0 : index
    %15 = vector.load %arg5[%c0_13, %c0_14] : memref<1x8xf32, #tpu.memory_space<vmem>>, vector<1x8xf32>
    %16 = vector.broadcast %15 : vector<1x8xf32> to vector<2x8xf32>
    %17 = arith.addf %14, %16 : vector<2x8xf32>
    %18 = arith.negf %17 : vector<2x8xf32>
    %19 = math.exp %18 : vector<2x8xf32>
    %cst_15 = arith.constant 1.000000e+00 : f32
    %20 = vector.broadcast %cst_15 : f32 to vector<2x8xf32>
    %21 = arith.addf %20, %19 : vector<2x8xf32>
    %22 = arith.divf %20, %21 : vector<2x8xf32>
    %c0_16 = arith.constant 0 : index
    %c0_17 = arith.constant 0 : index
    %c0_18 = arith.constant 0 : index
    %23 = vector.load %arg1[%c0_16, %c0_17, %c0_18] : memref<2x8x256xf32, #tpu.memory_space<vmem>>, vector<2x8x256xf32>
    %24 = vector.shape_cast %22 : vector<2x8xf32> to vector<2x8x1xf32>
    %25 = vector.broadcast %24 : vector<2x8x1xf32> to vector<2x8x256xf32>
    %26 = arith.mulf %23, %25 : vector<2x8x256xf32>
    %c0_19 = arith.constant 0 : index
    %c0_20 = arith.constant 0 : index
    %c0_21 = arith.constant 0 : index
    %27 = vector.load %arg6[%c0_19, %c0_20, %c0_21] : memref<2x8x256xf32, #tpu.memory_space<vmem>>, vector<2x8x256xf32>
    tpu.vector_store %arg6[%c0_19, %c0_20, %c0_21], %26 {strides = array<i32>} : memref<2x8x256xf32, #tpu.memory_space<vmem>>, vector<2x8x256xf32>,
    return
  }
  func.func @transform_0(%arg0: i32) -> (i32, i32, i32) {
    %c0_i32 = arith.constant 0 : i32
    %c0_i32_0 = arith.constant 0 : i32
    %c0_i32_1 = arith.constant 0 : i32
    return %arg0, %c0_i32, %c0_i32_0 : i32, i32, i32
  }
  func.func @transform_1(%arg0: i32) -> (i32, i32) {
    %c0_i32 = arith.constant 0 : i32
    %c0_i32_0 = arith.constant 0 : i32
    %c0_i32_1 = arith.constant 0 : i32
    return %c0_i32, %c0_i32_0 : i32, i32
  }
  func.func @transform_2(%arg0: i32) -> (i32, i32) {
    %c0_i32 = arith.constant 0 : i32
    %c0_i32_0 = arith.constant 0 : i32
    %c0_i32_1 = arith.constant 0 : i32
    return %c0_i32, %c0_i32_0 : i32, i32
  }
  func.func @transform_3(%arg0: i32) -> (i32, i32) {
    %c0_i32 = arith.constant 0 : i32
    %c0_i32_0 = arith.constant 0 : i32
    %c0_i32_1 = arith.constant 0 : i32
    return %c0_i32, %c0_i32_0 : i32, i32
  }
  func.func @transform_4(%arg0: i32) -> (i32, i32) {
    %c0_i32 = arith.constant 0 : i32
    %c0_i32_0 = arith.constant 0 : i32
    %c0_i32_1 = arith.constant 0 : i32
    return %c0_i32, %c0_i32_0 : i32, i32
  }
  func.func @transform_5(%arg0: i32) -> (i32, i32, i32) {
    %c0_i32 = arith.constant 0 : i32
    %c0_i32_0 = arith.constant 0 : i32
    %c0_i32_1 = arith.constant 0 : i32
    return %arg0, %c0_i32, %c0_i32_0 : i32, i32, i32
  }
}

</mosaic_0001>

<bundles_post_ra>
// kernel: tpu_custom_call.1
= control target key start
LH: loop header
LB: loop body
LE: loop exit
PB: predicated region body
PF: predicated region fallthrough
CT: control target
= control target key end

     0   :  { %10 = vsyncpa [#allocation3], 0  ;;  %s315_s0 = inlined_call_operand.hbm [shape: f32[2,8,256], index: 0, kind: input, shape index: {}]   ;;  %s316_s1 = inlined_call_operand.vmem [shape: f32[8,2], index: 1, kind: input, shape index: {}]   ;;  %s317_s2 = inlined_call_operand.vmem [shape: f32[1,2], index: 2, kind: input, shape index: {}]   ;;  %s318_s3 = inlined_call_operand.vmem [shape: f32[2,8], index: 3, kind: input, shape index: {}]   ;;  %s319_s4 = inlined_call_operand.vmem [shape: f32[1,8], index: 4, kind: input, shape index: {}]   ;;  %s320_s5 = inlined_call_operand.hbm [shape: f32[2,8,256], index: 5, kind: output, shape index: {}]  }
   0x1   :  { %11 = vsyncpa [#allocation4], 0  ;;  %s16_s20 = sshll.u32 %s315_s0, 4  ;;  %s249_s21 = smov [#allocation2]   ;;  %s17_s20 = int_to_ptr.hbm [resolvable:$true] %s16_s20 }
   0x2   :  { %s18_s22 = sshll.u32 %s249_s21, 4  ;;  %s250_s23 = smov 256   ;;  %s19_s22 = int_to_ptr.vmem [resolvable:$true] %s18_s22 }
   0x3   :  { %s251_s24 = smov 16  }
   0x4   :  { %24 = dma.hbm_to_vmem [thread:$0]  %s17_s20, 512, %s19_s22, [#allocation3], %s250_s23, %s250_s23, %s251_s24  }
   0x5   :  { %245 = dma.done.wait [#allocation3], 512  }
   0x6   :  { %246 = vsyncadd [#allocation3], 4294966784  ;;  %v37_v0 = vld [vmem:[#allocation2] sm:$0xff]  ;;  %v38_v1 = vld [vmem:[#allocation2 + $0x8] sm:$0xff]  ;;  %v58_v8 = vlaneseq  ;;  %vm62_vm0 = vcmask 1041409   ;;  %vm64_vm1 = vcmask 64512  }
   0x7   :  { %v41_v2 = vadd.f32 %v38_v1, %v37_v0  ;;  %v289_v3 = vld [vmem:[#allocation2 + $0x10] sm:$0xff]  ;;  %v291_v4 = vld [vmem:[#allocation2 + $0x18] sm:$0xff]  ;;  %v51_v6 = vld [vmem:[%s316_s1] sm:$0xff]  ;;  %vm97_vm2 = vcmask 1041408   ;;  %vm93_vm3 = vcmask 15360   ;;  %s168_s7 = sshll.u32 %s320_s5, 4  ;;  %s169_s7 = int_to_ptr.hbm [resolvable:$true] %s168_s7 }
   0x8   :  { %v44_v5 = vadd.f32 %v291_v4, %v289_v3  ;;  %82 = vmatpush.msra.mxu0 %v51_v6  ;;  %v59_v9 = vand.u32 127, %v58_v8  ;;  %v88_v16 = vld [vmem:[%s318_s3] sm:$0x3]  ;;  %v142_v21 = vshrl.u32 %v58_v8, 7 }
   0x9   :  { %42 = vadd.xlane.f32.xlu0 %v41_v2  ;;  %182 = vmatpush.msk.msra.mxu1 %vm97_vm2, %v88_v16  ;;  %v191_v17 = vld [vmem:[%s317_s2] ss:$0 sm:$0xff]  ;;  %s252_s2 = smov [#allocation5]  }
   0xa   :  { %189 = vset.pattern.permute.xlu1 %v142_v21  ;;  %190 = vset.pattern.permute.xlu0 %v142_v21  ;;  %v192_v22 = vld [vmem:[%s319_s4] ss:$0 sm:$0xff]  ;;  %s166_s3 = sshll.u32 %s252_s2, 4  ;;  %s167_s3 = int_to_ptr.vmem [resolvable:$true] %s166_s3 }
  0x11   :  { %45 = vadd.xlane.f32.xlu0 %v44_v5 }
  0x7c   :  { %v43_v7 = vpop.xlane.xlu0 %42 }
  0x7d   :  { %v49_v10 = vmul.f32 0.00390625, %v43_v7 }
  0x7f   :  { %v60_v13 = vperm.slane %v49_v10, %v59_v9 }
  0x84   :  { %v46_v11 = vpop.xlane.xlu0 %45 }
  0x85   :  { %v50_v12 = vmul.f32 0.00390625, %v46_v11 }
  0x87   :  { %v61_v14 = vperm.slane %v50_v12, %v59_v9 }
  0x89   :  { %v63_v15 = vsel %vm62_vm0, %v61_v14, %v60_v13 }
  0x8a   :  { %181 = vmatmul.msk.f32.vlgmr.msra.gmra.mxu0 %vm64_vm1, %v63_v15 }
 0x107   :  { %v84_v18 = vpop.f32.mrf.mxu0 }
 0x108   :  { %v85_v19 = vadd.f32 %v191_v17, %v84_v18 }
 0x10a   :  { %v87_v20 = vmax.f32 %v85_v19, 0.0 }
 0x10c   :  { %183 = vmatmul.msk.f32.vlgmr.msra.gmra.mxu1 %vm93_vm3, %v87_v20 }
 0x189   :  { %v118_v23 = vpop.f32.mrf.mxu1 }
 0x18a   :  { %v119_v24 = vadd.f32 %v192_v22, %v118_v23 }
 0x18c   :  { %v184_v25 = vmul.f32 -1.442695, %v119_v24 }
 0x18e   :  { %193 = vpow2.f32 %v184_v25 }
 0x194   :  { %v194_v26 = vpop.eup %193 }
 0x195   :  { %v124_v27 = vadd.f32 1.0, %v194_v26 }
 0x197   :  { %195 = vrcp.f32 %v124_v27  ;;  %v136_v31 = vand.u32 2147483648, %v124_v27  ;;  %v134_v33 = vand.u32 2147483647, %v124_v27  ;;  %vm130_vm5 = vweird.f32 %v124_v27 }
 0x199   :  { %v137_v35 = vor.u32 1.1754944e-38, %v136_v31  ;;  %vm135_vm7 = vcmp.eq.f32.partialorder %v134_v33, 8.507059e+37 }
 0x19d   :  { %v196_v28 = vpop.eup %195 }
 0x19e   :  { %v126_v29 = vmul.f32 %v196_v28, %v124_v27  ;;  %vm131_vm4 = vweird.f32 %v196_v28 }
 0x19f   :  { %vm132_vm6 = vmor %vm130_vm5, %vm131_vm4 }
 0x1a0   :  { %v127_v30 = vsub.f32 1.0, %v126_v29 }
 0x1a2   :  { %v128_v32 = vmul.f32 %v196_v28, %v127_v30 }
 0x1a4   :  { %v129_v34 = vadd.f32 %v196_v28, %v128_v32 }
 0x1a6   :  { %v133_v36 = vsel %vm132_vm6, %v196_v28, %v129_v34 }
 0x1a7   :  { %v138_v37 = vsel %vm135_vm7, %v137_v35, %v133_v36 }
 0x1a8   :  { %v140_v38 = vperm.slane %v138_v37, 0  ;;  %v147_v39 = vperm.slane %v138_v37, 1 }
 0x1aa   :  { %145 = vperm.xlu1 %189, %v140_v38  }
 0x1b2   :  { %152 = vperm.xlu1 %189, %v147_v39  }
 0x21c   :  { %v146_v40 = vpop.permute.xlu1 %145 }
 0x21d   :  { %v154_v41 = vmul.f32 %v146_v40, %v37_v0  ;;  %v155_v42 = vmul.f32 %v146_v40, %v38_v1 }
 0x21f   :  { %158 = vst [vmem:[#allocation5] sm:$0xff] %v154_v41 }
 0x220   :  { %159 = vst [vmem:[#allocation5 + $0x8] sm:$0xff] %v155_v42 }
 0x224   :  { %v153_v43 = vpop.permute.xlu1 %152 }
 0x225   :  { %v156_v44 = vmul.f32 %v153_v43, %v289_v3  ;;  %v157_v45 = vmul.f32 %v153_v43, %v291_v4 }
 0x227   :  { %160 = vst [vmem:[#allocation5 + $0x10] sm:$0xff] %v156_v44 }
 0x228   :  { %161 = vst [vmem:[#allocation5 + $0x18] sm:$0xff] %v157_v45 }
 0x229   :  { %174 = dma.vmem_to_hbm [thread:$0]  %s167_s3, 512, %s169_s7, [#allocation4], %s250_s23, %s250_s23, %s251_s24  }
 0x22a   :  { %247 = dma.done.wait [#allocation4], 512  }
 0x22b   :  { %248 = vsyncadd [#allocation4], 4294966784 }
 0x22c   :  { %179 = vsyncpa [#allocation3], 1 }
 0x22d   :  { %180 = vsyncpa [#allocation4], 1 }

</bundles_post_ra>
